<compile_context>
chip_gen: v6e
topology: v6e:2x2x1
jax: 0.10.0
libtpu: 0.0.40
codegen_flags: <defaults>
</compile_context>

<pallas_src>
import jax
import jax.numpy as jnp
from jax.experimental import pallas as pl
from jax.experimental.pallas import tpu as pltpu


def _round_up(x, m):
    return (x + m - 1) // m * m


def _choose_batch_tile(B, max_tile=1024):
    """Pick TB (multiple of 16, bf16 sublane packing) so that:
       - TB <= max_tile (keeps double-buffered x/out tiles at ~1 MiB VMEM),
       - padding waste is bounded (TB ~ cdiv(B, n) instead of round_up(B, TB)),
       - when B >= 512 the grid has >= 2 steps so megacore (v7x) splits the
         batch across both TensorCores while keeping TB >= 256 (overhead-
         amortized)."""
    n = max(1, pl.cdiv(B, max_tile))
    if B >= 512 and n < 2:
        n = 2
    return _round_up(pl.cdiv(B, n), 16)


def dqn1_kernel(x_ref, w1_ref, b1_ref, w2_ref, b2_ref, o_ref):
    # fc1: [TB, Ip]bf16 @ [Ip, Hp]bf16 -> f32 accumulate, + bias, ReLU
    h = jnp.dot(x_ref[...], w1_ref[...], preferred_element_type=jnp.float32)
    h = jnp.maximum(h + b1_ref[...], 0.0)
    # fc2 kept fully in f32 (no bf16 re-quantization of the hidden activation).
    y = jnp.dot(h, w2_ref[...], preferred_element_type=jnp.float32)
    y = jnp.maximum(y + b2_ref[...], 0.0)
    # bf16 store: lane-dense (Op multiple of 128) unmasked vst, half the bytes.
    o_ref[...] = y.astype(o_ref.dtype)


def prepare_params(w1, b1, w2, b2):
    """Pad + cast the (static) weights/biases ONCE.  Hoisted out of the
       per-call path; callers should cache the returned tuple.
       w1: [inputs, nodes1], b1: [1, nodes1], w2: [nodes1, outputs],
       b2: [1, outputs] (weights pre-transposed to [in, out])."""
    I, H = w1.shape
    O = w2.shape[1]
    Ip, Hp, Op = _round_up(I, 128), _round_up(H, 128), _round_up(O, 128)
    w1p = jnp.zeros((Ip, Hp), jnp.bfloat16).at[:I, :H].set(w1.astype(jnp.bfloat16))
    b1p = jnp.zeros((1, Hp), jnp.float32).at[:, :H].set(b1.astype(jnp.float32))
    w2p = jnp.zeros((Hp, Op), jnp.float32).at[:H, :O].set(w2.astype(jnp.float32))
    b2p = jnp.zeros((1, Op), jnp.float32).at[:, :O].set(b2.astype(jnp.float32))
    return (w1p, b1p, w2p, b2p)


def dqn1_forward(x, params, outputs, *, max_batch_tile=1024):
    """x: [B, inputs] f32; params: output of prepare_params (cached);
       outputs: logical number of actions (static).  Returns [B, outputs] f32."""
    w1p, b1p, w2p, b2p = params
    B, I = x.shape
    Ip, Hp = w1p.shape
    Op = w2p.shape[1]
    O = outputs

    TB = _choose_batch_tile(B, max_batch_tile)
    Bp = _round_up(B, TB)

    # Only x is padded per call; padded columns/rows stay exactly zero
    # through both ReLUs.  Fuses with the rest of the caller's jit.
    xp = jnp.zeros((Bp, Ip), jnp.bfloat16).at[:B, :I].set(x.astype(jnp.bfloat16))

    grid = (Bp // TB,)
    flops = 2 * Bp * (Ip * Hp + Hp * Op)
    bytes_accessed = (xp.size * 2 + w1p.size * 2 + w2p.size * 4
                      + b1p.size * 4 + b2p.size * 4 + Bp * Op * 2)

    out_p = pl.pallas_call(
        dqn1_kernel,
        out_shape=jax.ShapeDtypeStruct((Bp, Op), jnp.bfloat16),
        grid_spec=pltpu.PrefetchScalarGridSpec(
            num_scalar_prefetch=0,
            grid=grid,
            in_specs=[
                pl.BlockSpec((TB, Ip), lambda i: (i, 0)),   # x tile streams
                pl.BlockSpec((Ip, Hp), lambda i: (0, 0)),   # w1 resident (bf16)
                pl.BlockSpec((1, Hp), lambda i: (0, 0)),    # b1 resident (f32)
                pl.BlockSpec((Hp, Op), lambda i: (0, 0)),   # w2 resident (f32)
                pl.BlockSpec((1, Op), lambda i: (0, 0)),    # b2 resident (f32)
            ],
            out_specs=pl.BlockSpec((TB, Op), lambda i: (i, 0)),
        ),
        compiler_params=pltpu.CompilerParams(
            dimension_semantics=("parallel",),
        ),
        cost_estimate=pl.CostEstimate(
            flops=flops, transcendentals=0, bytes_accessed=bytes_accessed),
    )(xp, w1p, b1p, w2p, b2p)

    # Slice away padded rows/action-columns and restore the module's f32
    # output dtype.  Under the caller's jit this fuses with the downstream
    # consumer (e.g. argmax over actions) instead of materializing a copy.
    return out_p[:B, :O].astype(jnp.float32)


def init_params(key, inputs, nodes1, outputs):
    """Deterministic init mirroring nn.Linear default (uniform +/-1/sqrt(fan_in)).
       Weights stored pre-transposed: [in_features, out_features]."""
    k1, k2, k3, k4 = jax.random.split(key, 4)
    bound1 = 1.0 / jnp.sqrt(inputs)
    bound2 = 1.0 / jnp.sqrt(nodes1)
    w1 = jax.random.uniform(k1, (inputs, nodes1), jnp.float32, -bound1, bound1)
    b1 = jax.random.uniform(k2, (1, nodes1), jnp.float32, -bound1, bound1)
    w2 = jax.random.uniform(k3, (nodes1, outputs), jnp.float32, -bound2, bound2)
    b2 = jax.random.uniform(k4, (1, outputs), jnp.float32, -bound2, bound2)
    return w1, b1, w2, b2


if __name__ == "__main__":
    inputs, nodes1, outputs = 32, 64, 16
    batch = 8

    key = jax.random.PRNGKey(0)
    kx, kp = jax.random.split(key)
    x = jax.random.normal(kx, (batch, inputs), jnp.float32)
    w1, b1, w2, b2 = init_params(kp, inputs, nodes1, outputs)

    # Pad/cast weights once (cached); only x is processed per call.
    params = jax.tree_util.tree_map(jax.block_until_ready,
                                    prepare_params(w1, b1, w2, b2))

    fwd = jax.jit(dqn1_forward, static_argnums=(2,))
    out = jax.block_until_ready(fwd(x, params, outputs))

    # f32 reference (same math as the PyTorch forward).  fc1 uses bf16
    # operands with f32 accumulation and the output is stored as bf16, so use
    # a loose tolerance.
    ref = jnp.maximum(jnp.maximum(x @ w1 + b1, 0.0) @ w2 + b2, 0.0)
    assert out.shape == (batch, outputs)
    assert jnp.allclose(out, ref, atol=3e-2, rtol=3e-2), float(
        jnp.max(jnp.abs(out - ref)))

    print("KERNEL_OK")
</pallas_src>

<mosaic_0001>
module attributes {stable_mosaic.version = 11 : i64} {
  func.func @dqn1_kernel(%arg0: i32, %arg1: memref<16x128xbf16, #tpu.memory_space<vmem>>, %arg2: memref<128x128xbf16, #tpu.memory_space<vmem>>, %arg3: memref<1x128xf32, #tpu.memory_space<vmem>>, %arg4: memref<128x128xf32, #tpu.memory_space<vmem>>, %arg5: memref<1x128xf32, #tpu.memory_space<vmem>>, %arg6: memref<16x128xbf16, #tpu.memory_space<vmem>>) attributes {dimension_semantics = [#tpu.dimension_semantics<parallel>], iteration_bounds = array<i64: 1>, scalar_prefetch = 0 : i64, scratch_operands = 0 : i64, tpu.core_type = #tpu.core_type<tc>, window_params = [{transform_indices = @transform_0, window_bounds = array<i64: 16, 128>}, {pipeline_mode = #tpu.pipeline_mode<synchronous>, transform_indices = @transform_1, window_bounds = array<i64: 128, 128>}, {pipeline_mode = #tpu.pipeline_mode<synchronous>, transform_indices = @transform_2, window_bounds = array<i64: 1, 128>}, {pipeline_mode = #tpu.pipeline_mode<synchronous>, transform_indices = @transform_3, window_bounds = array<i64: 128, 128>}, {pipeline_mode = #tpu.pipeline_mode<synchronous>, transform_indices = @transform_4, window_bounds = array<i64: 1, 128>}, {transform_indices = @transform_5, window_bounds = array<i64: 16, 128>}]} {
    %c0 = arith.constant 0 : index
    %c0_0 = arith.constant 0 : index
    %0 = vector.load %arg1[%c0, %c0_0] : memref<16x128xbf16, #tpu.memory_space<vmem>>, vector<16x128xbf16>
    %c0_1 = arith.constant 0 : index
    %c0_2 = arith.constant 0 : index
    %1 = vector.load %arg2[%c0_1, %c0_2] : memref<128x128xbf16, #tpu.memory_space<vmem>>, vector<128x128xbf16>
    %cst = arith.constant dense<0.000000e+00> : vector<16x128xf32>
    %2 = tpu.matmul %0, %1, %cst {dimension_numbers = #tpu.dot_dimension_numbers<[1], [0], [0], [1], [0, 0, 1, 1], [], []>} : vector<16x128xbf16>, vector<128x128xbf16>, vector<16x128xf32> -> vector<16x128xf32>
    %c0_3 = arith.constant 0 : index
    %c0_4 = arith.constant 0 : index
    %3 = vector.load %arg3[%c0_3, %c0_4] : memref<1x128xf32, #tpu.memory_space<vmem>>, vector<1x128xf32>
    %4 = vector.broadcast %3 : vector<1x128xf32> to vector<16x128xf32>
    %5 = arith.addf %2, %4 : vector<16x128xf32>
    %cst_5 = arith.constant 0.000000e+00 : f32
    %6 = vector.broadcast %cst_5 : f32 to vector<16x128xf32>
    %7 = arith.maximumf %5, %6 : vector<16x128xf32>
    %c0_6 = arith.constant 0 : index
    %c0_7 = arith.constant 0 : index
    %8 = vector.load %arg4[%c0_6, %c0_7] : memref<128x128xf32, #tpu.memory_space<vmem>>, vector<128x128xf32>
    %cst_8 = arith.constant dense<0.000000e+00> : vector<16x128xf32>
    %9 = tpu.matmul %7, %8, %cst_8 {dimension_numbers = #tpu.dot_dimension_numbers<[1], [0], [0], [1], [0, 0, 1, 1], [], []>} : vector<16x128xf32>, vector<128x128xf32>, vector<16x128xf32> -> vector<16x128xf32>
    %c0_9 = arith.constant 0 : index
    %c0_10 = arith.constant 0 : index
    %10 = vector.load %arg5[%c0_9, %c0_10] : memref<1x128xf32, #tpu.memory_space<vmem>>, vector<1x128xf32>
    %11 = vector.broadcast %10 : vector<1x128xf32> to vector<16x128xf32>
    %12 = arith.addf %9, %11 : vector<16x128xf32>
    %cst_11 = arith.constant 0.000000e+00 : f32
    %13 = vector.broadcast %cst_11 : f32 to vector<16x128xf32>
    %14 = arith.maximumf %12, %13 : vector<16x128xf32>
    %15 = arith.truncf %14 : vector<16x128xf32> to vector<16x128xbf16>
    %c0_12 = arith.constant 0 : index
    %c0_13 = arith.constant 0 : index
    %16 = vector.load %arg6[%c0_12, %c0_13] : memref<16x128xbf16, #tpu.memory_space<vmem>>, vector<16x128xbf16>
    tpu.vector_store %arg6[%c0_12, %c0_13], %15 {strides = array<i32>} : memref<16x128xbf16, #tpu.memory_space<vmem>>, vector<16x128xbf16>,
    return
  }
  func.func @transform_0(%arg0: i32) -> (i32, i32) {
    %c0_i32 = arith.constant 0 : i32
    %c0_i32_0 = arith.constant 0 : i32
    return %arg0, %c0_i32 : i32, i32
  }
  func.func @transform_1(%arg0: i32) -> (i32, i32) {
    %c0_i32 = arith.constant 0 : i32
    %c0_i32_0 = arith.constant 0 : i32
    %c0_i32_1 = arith.constant 0 : i32
    return %c0_i32, %c0_i32_0 : i32, i32
  }
  func.func @transform_2(%arg0: i32) -> (i32, i32) {
    %c0_i32 = arith.constant 0 : i32
    %c0_i32_0 = arith.constant 0 : i32
    %c0_i32_1 = arith.constant 0 : i32
    return %c0_i32, %c0_i32_0 : i32, i32
  }
  func.func @transform_3(%arg0: i32) -> (i32, i32) {
    %c0_i32 = arith.constant 0 : i32
    %c0_i32_0 = arith.constant 0 : i32
    %c0_i32_1 = arith.constant 0 : i32
    return %c0_i32, %c0_i32_0 : i32, i32
  }
  func.func @transform_4(%arg0: i32) -> (i32, i32) {
    %c0_i32 = arith.constant 0 : i32
    %c0_i32_0 = arith.constant 0 : i32
    %c0_i32_1 = arith.constant 0 : i32
    return %c0_i32, %c0_i32_0 : i32, i32
  }
  func.func @transform_5(%arg0: i32) -> (i32, i32) {
    %c0_i32 = arith.constant 0 : i32
    %c0_i32_0 = arith.constant 0 : i32
    return %arg0, %c0_i32 : i32, i32
  }
}

</mosaic_0001>

<bundles_post_ra>
// kernel: dqn1_forward.1
= control target key start
LH: loop header
LB: loop body
LE: loop exit
PB: predicated region body
PF: predicated region fallthrough
CT: control target
= control target key end

     0   :  { %10 = vsyncpa [#allocation3], 0  ;;  %s506_s0 = inlined_call_operand.vmem [shape: bf16[16,128], index: 0, kind: input, shape index: {}]   ;;  %s507_s1 = inlined_call_operand.hbm [shape: bf16[128,128], index: 1, kind: input, shape index: {}]   ;;  %s508_s2 = inlined_call_operand.vmem [shape: f32[1,128], index: 2, kind: input, shape index: {}]   ;;  %s509_s3 = inlined_call_operand.hbm [shape: f32[128,128], index: 3, kind: input, shape index: {}]   ;;  %s510_s4 = inlined_call_operand.vmem [shape: f32[1,128], index: 4, kind: input, shape index: {}]   ;;  %s511_s5 = inlined_call_operand.vmem [shape: bf16[16,128], index: 5, kind: output, shape index: {}]  }
   0x1   :  { %11 = vsyncpa [#allocation5], 0  ;;  %s450_s18 = smov [#allocation2]  }
   0x2   :  { %s19_s19 = sshll.u32 %s450_s18, 4  ;;  %s20_s19 = int_to_ptr.vmem [resolvable:$true] %s19_s19 }
   0x3   :  { %s414_s20 = scalar_lea.vmem %s20_s19, 1024  ;;  %p419_p1 = scmp.lt.s32.totalorder %s20_s19, %s20_s19 }
   0x4   :  { %p415_p0 = scmp.ne.s32.totalorder %s20_s19, %s414_s20  ;;  %p420_p2 = scmp.lt.s32.totalorder %s414_s20, %s414_s20 }
   0x6   :  { %p421_p3 = por %p420_p2, %p419_p1 }
   0x8   :  { %p422_p4 = pnand %p421_p3, %p415_p0 }
   0xa   :  { %425 = shalt.err (!%p422_p4)
}
   0xb   :  { %s451_s21 = smov 64   ;;  %s452_s22 = smov 4  }
   0xc   :  { %25 = dma.hbm_to_vmem [thread:$0]  %s507_s1, 1024, %s20_s19, [#allocation3], %s451_s21, %s451_s21, %s452_s22  }
   0xd   :  { %s453_s25 = smov [#allocation4]  }
   0xe   :  { %s33_s26 = sshll.u32 %s453_s25, 4  ;;  %s34_s26 = int_to_ptr.vmem [resolvable:$true] %s33_s26 }
   0xf   :  { %s434_s27 = scalar_lea.vmem %s34_s26, 2048  ;;  %p439_p6 = scmp.lt.s32.totalorder %s34_s26, %s34_s26 }
  0x10   :  { %p435_p5 = scmp.ne.s32.totalorder %s34_s26, %s434_s27  ;;  %p440_p7 = scmp.lt.s32.totalorder %s434_s27, %s434_s27 }
  0x12   :  { %p441_p8 = por %p440_p7, %p439_p6 }
  0x14   :  { %p442_p9 = pnand %p441_p8, %p435_p5 }
  0x16   :  { %445 = shalt.err (!%p442_p9)
}
  0x17   :  { %s454_s28 = smov 128   ;;  %s455_s29 = smov 8  }
  0x18   :  { %39 = dma.hbm_to_vmem [thread:$0]  %s509_s3, 2048, %s34_s26, [#allocation5], %s454_s28, %s454_s28, %s455_s29  }
  0x19   :  { %446 = dma.done.wait [#allocation3], 1024  }
  0x1a   :  { %447 = vsyncadd [#allocation3], 4294966272 }
  0x1b   :  { %448 = dma.done.wait [#allocation5], 2048  }
  0x1c   :  { %449 = vsyncadd [#allocation5], 4294965248  ;;  %v456_v0 = vmov 0.0   ;;  %vm457_vm0 = vmmov 0   ;;  %v397_v1 = vld [vmem:[#allocation2 + $0x38] sm:$0xff]   ;;  %v398_v2 = vld [vmem:[#allocation2 + $0x30] sm:$0xff]  }
  0x1d   :  { %334 = vmatprep.subr.bf16.mxu0 %v456_v0  ;;  %350 = vmatprep.mubr.msk.bf16.mxu0 %vm457_vm0, %v456_v0  ;;  %v399_v3 = vld [vmem:[#allocation2 + $0x28] sm:$0xff]   ;;  %v186_v4 = vld [vmem:[#allocation4 + $0x78] sm:$0xff]  ;;  %v185_v5 = vld [vmem:[#allocation4 + $0x70] sm:$0xff] }
  0x1e   :  { %335 = vmatpush3.bf16.msra.mxu0 %v397_v1  ;;  %v400_v6 = vld [vmem:[#allocation2 + $0x20] sm:$0xff]   ;;  %354 = vmatprep.subr.mxu1 %v186_v4  ;;  %v184_v7 = vld [vmem:[#allocation4 + $0x68] sm:$0xff]  ;;  %v401_v9 = vld [vmem:[#allocation2 + $0x18] sm:$0xff]  }
  0x1f   :  { %336 = vmatprep.subr.bf16.mxu0 %v456_v0  ;;  %355 = vmatpush3.msra.mxu1 %v186_v4  ;;  %v183_v8 = vld [vmem:[#allocation4 + $0x60] sm:$0xff]  ;;  %v182_v10 = vld [vmem:[#allocation4 + $0x58] sm:$0xff]  ;;  %v181_v11 = vld [vmem:[#allocation4 + $0x50] sm:$0xff] }
  0x20   :  { %356 = vmatprep.subr.mxu1 %v185_v5  ;;  %v402_v12 = vld [vmem:[#allocation2 + $0x10] sm:$0xff]   ;;  %v180_v13 = vld [vmem:[#allocation4 + $0x48] sm:$0xff]  ;;  %v179_v14 = vld [vmem:[#allocation4 + $0x40] sm:$0xff] }
  0x21   :  { %357 = vmatpush3.msra.mxu1 %v185_v5  ;;  %v403_v15 = vld [vmem:[#allocation2 + $0x8] sm:$0xff]   ;;  %v178_v16 = vld [vmem:[#allocation4 + $0x38] sm:$0xff]  ;;  %v177_v17 = vld [vmem:[#allocation4 + $0x30] sm:$0xff] }
  0x22   :  { %337 = vmatpush3.bf16.msra.mxu0 %v398_v2  ;;  %358 = vmatprep.subr.mxu1 %v184_v7  ;;  %v404_v18 = vld [vmem:[#allocation2] sm:$0xff]   ;;  %v176_v19 = vld [vmem:[#allocation4 + $0x28] sm:$0xff]  ;;  %v174_v22 = vld [vmem:[#allocation4 + $0x18] sm:$0xff] }
  0x23   :  { %338 = vmatprep.subr.bf16.mxu0 %v456_v0  ;;  %359 = vmatpush3.msra.mxu1 %v184_v7  ;;  %v405_v20 = vld [vmem:[%s506_s0] sm:$0xff]   ;;  %v173_v23 = vld [vmem:[#allocation4 + $0x10] sm:$0xff]  ;;  %v172_v24 = vld [vmem:[#allocation4 + $0x8] sm:$0xff] }
  0x24   :  { %360 = vmatprep.subr.mxu1 %v183_v8  ;;  %v175_v21 = vld [vmem:[#allocation4 + $0x20] sm:$0xff] }
  0x25   :  { %361 = vmatpush3.msra.mxu1 %v183_v8  ;;  %v171_v25 = vld [vmem:[#allocation4] sm:$0xff] }
  0x26   :  { %339 = vmatpush3.bf16.msra.mxu0 %v399_v3  ;;  %362 = vmatprep.subr.mxu1 %v182_v10  ;;  %v287_v26 = vld [vmem:[%s508_s2] ss:$0 sm:$0xff] }
  0x27   :  { %340 = vmatprep.subr.bf16.mxu0 %v456_v0  ;;  %363 = vmatpush3.msra.mxu1 %v182_v10  ;;  %v297_v35 = vld [vmem:[%s510_s4] ss:$0 sm:$0xff] }
  0x28   :  { %364 = vmatprep.subr.mxu1 %v181_v11 }
  0x29   :  { %365 = vmatpush3.msra.mxu1 %v181_v11 }
  0x2a   :  { %341 = vmatpush3.bf16.msra.mxu0 %v400_v6  ;;  %366 = vmatprep.subr.mxu1 %v180_v13 }
  0x2b   :  { %342 = vmatprep.subr.bf16.mxu0 %v456_v0  ;;  %367 = vmatpush3.msra.mxu1 %v180_v13 }
  0x2c   :  { %368 = vmatprep.subr.mxu1 %v179_v14 }
  0x2d   :  { %369 = vmatpush3.msra.mxu1 %v179_v14 }
  0x2e   :  { %343 = vmatpush3.bf16.msra.mxu0 %v401_v9  ;;  %370 = vmatprep.subr.mxu1 %v178_v16 }
  0x2f   :  { %344 = vmatprep.subr.bf16.mxu0 %v456_v0  ;;  %371 = vmatpush3.msra.mxu1 %v178_v16 }
  0x30   :  { %372 = vmatprep.subr.mxu1 %v177_v17 }
  0x31   :  { %373 = vmatpush3.msra.mxu1 %v177_v17 }
  0x32   :  { %345 = vmatpush3.bf16.msra.mxu0 %v402_v12  ;;  %374 = vmatprep.subr.mxu1 %v176_v19 }
  0x33   :  { %346 = vmatprep.subr.bf16.mxu0 %v456_v0  ;;  %375 = vmatpush3.msra.mxu1 %v176_v19 }
  0x34   :  { %376 = vmatprep.subr.mxu1 %v175_v21 }
  0x35   :  { %377 = vmatpush3.msra.mxu1 %v175_v21 }
  0x36   :  { %347 = vmatpush3.bf16.msra.mxu0 %v403_v15  ;;  %378 = vmatprep.subr.mxu1 %v174_v22 }
  0x37   :  { %348 = vmatprep.subr.bf16.mxu0 %v456_v0  ;;  %379 = vmatpush3.msra.mxu1 %v174_v22 }
  0x38   :  { %380 = vmatprep.subr.mxu1 %v173_v23 }
  0x39   :  { %381 = vmatpush3.msra.mxu1 %v173_v23 }
  0x3a   :  { %349 = vmatpush3.bf16.msra.mxu0 %v404_v18  ;;  %382 = vmatprep.subr.mxu1 %v172_v24 }
  0x3b   :  { %383 = vmatpush3.msra.mxu1 %v172_v24 }
  0x3c   :  { %384 = vmatprep.subr.mxu1 %v171_v25 }
  0x3d   :  { %351 = vmatmul.mubr.bf16.vlgmr.msra.gmra.mxu0 %v405_v20  ;;  %385 = vmatpush3.msra.mxu1 %v171_v25 }
  0xfd   :  { %v162_v27 = vpop.f32.mrf.mxu0 }
  0xfe   :  { %v163_v28 = vadd.f32 %v287_v26, %v162_v27 }
  0xff   :  { %v352_v29 = vpop.f32.mrf.mxu0 }
 0x100   :  { %v169_v30 = vmax.f32 %v163_v28, 0.0 }
 0x101   :  { %v165_v31 = vpop.f32.mrf.mxu0 }
 0x102   :  { %v166_v32 = vadd.f32 %v287_v26, %v165_v31  ;;  %386 = vmatprep.mubr.f32.mxu1 %v169_v30 }
 0x103   :  { %v353_v33 = vpop.f32.mrf.mxu0 }
 0x104   :  { %v170_v34 = vmax.f32 %v166_v32, 0.0 }
 0x106   :  { %387 = vmatmul.mubr.f32.vlgmr.msra.gmra.mxu1 %v170_v34 }
 0x1c6   :  { %v388_v36 = vpop.f32.mrf.mxu1 }
 0x1c7   :  { %v266_v37 = vadd.f32 %v388_v36, %v297_v35 }
 0x1c8   :  { %v260_v38 = vpop.f32.mrf.mxu1 }
 0x1c9   :  { %v261_v39 = vadd.f32 %v297_v35, %v260_v38  ;;  %v270_v40 = vmax.f32 %v266_v37, 0.0 }
 0x1cb   :  { %v269_v41 = vmax.f32 %v261_v39, 0.0 }
 0x1cd   :  { %v305_v42 = vpack.c.bf16 %v270_v40, %v269_v41 }
 0x1cf   :  { %306 = vst [vmem:[%s511_s5] sm:$0xff] %v305_v42  }
 0x1d0   :  { %285 = vsyncpa [#allocation3], 1 }
 0x1d1   :  { %286 = vsyncpa [#allocation5], 1 }

</bundles_post_ra>
